<compile_context>
chip_gen: v7x
topology: tpu7x:2x2x1
jax: 0.10.0
libtpu: 0.0.40
codegen_flags: <defaults>
</compile_context>

<pallas_src>
import functools

import jax
import jax.numpy as jnp
from jax import lax
from jax.experimental import pallas as pl
from jax.experimental.pallas import tpu as pltpu

LANE = 128
SUBLANE = 8
MAX_TILE_ROWS = 4096           # 4096 x 128 f32 = 2 MiB per input per buffer
VMEM_LIMIT_BYTES = 32 << 20    # fits scoped VMEM on v5e/v6e/v7x with headroom


def _num_core_shards():
    """2 shards only on v7x (2 TensorCores/chip); 1 elsewhere."""
    try:
        kind = jax.devices()[0].device_kind.lower()
    except Exception:
        return 1
    return 2 if ("v7" in kind or "tpu7" in kind) else 1


def _dbmse_kernel(p_ref, t_ref, out_ref, acc_ref, *,
                  valid_rows, tiles_per_shard, tile_rows):
    c = pl.program_id(0)            # TensorCore shard (core-parallel on v7x)
    j = pl.program_id(1)            # tile index within the shard (sequential)

    @pl.when(j == 0)
    def _init():
        acc_ref[...] = jnp.zeros_like(acc_ref)

    # Global (unclamped) tile index; clamped duplicates / partial edge tiles
    # get their out-of-range rows masked below.
    blk = c * tiles_per_shard + j
    row0 = blk * tile_rows

    p = p_ref[...].astype(jnp.float32)
    t = t_ref[...].astype(jnp.float32)
    d = jnp.abs(p) - jnp.abs(t)
    sq = d * d                       # (tile_rows, LANE)

    n_groups = tile_rows // SUBLANE
    needs_mask = row0 + tile_rows > valid_rows

    @pl.when(jnp.logical_not(needs_mask))
    def _interior():
        acc_ref[...] += jnp.sum(sq.reshape(n_groups, SUBLANE, LANE), axis=0)

    @pl.when(needs_mask)
    def _edge():
        row_ids = lax.broadcasted_iota(jnp.int32, (tile_rows, LANE), 0) + row0
        # Keep this a select (NOT a 0/1 multiply): rows past the array end are
        # uninitialized VMEM and may hold Inf/NaN; the select discards them.
        msq = jnp.where(row_ids < valid_rows, sq, jnp.float32(0.0))
        acc_ref[...] += jnp.sum(msq.reshape(n_groups, SUBLANE, LANE), axis=0)

    @pl.when(j == pl.num_programs(1) - 1)
    def _finalize():
        out_ref[0] = acc_ref[...]


def _dbmse_loss(pred, target):
    """mean((|pred| - |target|)**2) over all elements, computed in Pallas."""
    assert pred.shape == target.shape
    n = int(pred.size)
    assert n > 0

    flat_p = jnp.reshape(pred, (-1,))
    flat_t = jnp.reshape(target, (-1,))

    rem = n % LANE
    main_n = n - rem

    # Sub-lane tail (< 128 elements): handled in plain JAX, added to kernel sum.
    tail_sum = jnp.float32(0.0)
    if rem:
        tp = flat_p[main_n:].astype(jnp.float32)
        tt = flat_t[main_n:].astype(jnp.float32)
        td = jnp.abs(tp) - jnp.abs(tt)
        tail_sum = jnp.sum(td * td)

    if main_n == 0:
        return tail_sum / jnp.float32(n)

    rows = main_n // LANE
    # NOTE: for rem != 0 the prefix slice could materialize a copy eagerly;
    # under jit XLA fuses/elides it, and rem != 0 is a rare edge case anyway.
    mp = (flat_p if rem == 0 else flat_p[:main_n]).reshape(rows, LANE)
    mt = (flat_t if rem == 0 else flat_t[:main_n]).reshape(rows, LANE)

    if rows >= MAX_TILE_ROWS:
        # Big arrays: large tiles, partial edge tile masked in-kernel (no pad).
        tile_rows = MAX_TILE_ROWS
        padded_rows = rows
    else:
        # Tiny arrays: pad a handful of rows to sublane (8) alignment.
        tile_rows = ((rows + SUBLANE - 1) // SUBLANE) * SUBLANE
        if tile_rows != rows:
            mp = jnp.pad(mp, ((0, tile_rows - rows), (0, 0)))
            mt = jnp.pad(mt, ((0, tile_rows - rows), (0, 0)))
        padded_rows = tile_rows

    num_tiles = pl.cdiv(padded_rows, tile_rows)
    num_shards = _num_core_shards() if num_tiles > 1 else 1
    tiles_per_shard = pl.cdiv(num_tiles, num_shards)

    def in_idx(c, j):
        blk = c * tiles_per_shard + j
        # Clamp fully-out-of-range tiles (they are masked to 0 in the kernel).
        return (jnp.minimum(blk, num_tiles - 1), 0)

    kernel = functools.partial(
        _dbmse_kernel,
        valid_rows=rows,
        tiles_per_shard=tiles_per_shard,
        tile_rows=tile_rows,
    )

    in_itemsize = (jnp.dtype(pred.dtype).itemsize
                   + jnp.dtype(target.dtype).itemsize)
    cost = pl.CostEstimate(
        flops=5 * main_n,
        transcendentals=0,
        bytes_accessed=main_n * in_itemsize + num_shards * SUBLANE * LANE * 4,
    )

    if num_shards > 1:
        dim_sem = (getattr(pltpu, "CORE_PARALLEL", "parallel"),
                   getattr(pltpu, "ARBITRARY", "arbitrary"))
    else:
        dim_sem = ("arbitrary", "arbitrary")

    partial_sums = pl.pallas_call(
        kernel,
        out_shape=jax.ShapeDtypeStruct((num_shards, SUBLANE, LANE), jnp.float32),
        grid_spec=pltpu.PrefetchScalarGridSpec(
            num_scalar_prefetch=0,
            grid=(num_shards, tiles_per_shard),
            in_specs=[
                pl.BlockSpec((tile_rows, LANE), in_idx),
                pl.BlockSpec((tile_rows, LANE), in_idx),
            ],
            out_specs=pl.BlockSpec((1, SUBLANE, LANE), lambda c, j: (c, 0, 0)),
            scratch_shapes=[pltpu.VMEM((SUBLANE, LANE), jnp.float32)],
        ),
        compiler_params=pltpu.CompilerParams(
            dimension_semantics=dim_sem,
            vmem_limit_bytes=VMEM_LIMIT_BYTES,
        ),
        cost_estimate=cost,
    )(mp, mt)

    total = jnp.sum(partial_sums) + tail_sum
    return total / jnp.float32(n)


dbmse_loss = jax.jit(_dbmse_loss)


if __name__ == "__main__":
    key = jax.random.PRNGKey(0)
    k1, k2, k3, k4, k5, k6 = jax.random.split(key, 6)

    # NCHW-like inputs, consistent with the module being a generic loss.
    pred = jax.random.normal(k1, (2, 4, 16, 16), dtype=jnp.float32)
    target = jax.random.normal(k2, (2, 4, 16, 16), dtype=jnp.float32)
    loss = dbmse_loss(pred, target)
    jax.block_until_ready(loss)
    ref = jnp.mean((jnp.abs(pred) - jnp.abs(target)) ** 2)
    assert jnp.allclose(loss, ref, rtol=1e-5, atol=1e-6), (loss, ref)

    # Odd-sized input: exercises the sub-lane tail + small-tile padding + mask.
    pred2 = jax.random.normal(k3, (3, 5, 7, 11), dtype=jnp.float32)
    target2 = jax.random.normal(k4, (3, 5, 7, 11), dtype=jnp.float32)
    loss2 = dbmse_loss(pred2, target2)
    jax.block_until_ready(loss2)
    ref2 = jnp.mean((jnp.abs(pred2) - jnp.abs(target2)) ** 2)
    assert jnp.allclose(loss2, ref2, rtol=1e-5, atol=1e-6), (loss2, ref2)

    # Multi-tile input: exercises the interior (unmasked) and edge (masked)
    # tile paths with the large streaming tile size.
    pred3 = jax.random.normal(k5, (2, 4, 256, 300), dtype=jnp.float32)
    target3 = jax.random.normal(k6, (2, 4, 256, 300), dtype=jnp.float32)
    loss3 = dbmse_loss(pred3, target3)
    jax.block_until_ready(loss3)
    ref3 = jnp.mean((jnp.abs(pred3) - jnp.abs(target3)) ** 2)
    assert jnp.allclose(loss3, ref3, rtol=1e-5, atol=1e-6), (loss3, ref3)

    print("KERNEL_OK")
</pallas_src>

<mosaic_0001>
module attributes {stable_mosaic.version = 11 : i64} {
  func.func @_dbmse_kernel(%arg0: i32, %arg1: i32, %arg2: memref<16x128xf32, #tpu.memory_space<vmem>>, %arg3: memref<16x128xf32, #tpu.memory_space<vmem>>, %arg4: memref<1x8x128xf32, #tpu.memory_space<vmem>>, %arg5: memref<8x128xf32, #tpu.memory_space<vmem>>) attributes {dimension_semantics = [#tpu.dimension_semantics<arbitrary>, #tpu.dimension_semantics<arbitrary>], iteration_bounds = array<i64: 1, 1>, scalar_prefetch = 0 : i64, scratch_operands = 1 : i64, tpu.core_type = #tpu.core_type<tc>, window_params = [{transform_indices = @transform_0, window_bounds = array<i64: 16, 128>}, {transform_indices = @transform_1, window_bounds = array<i64: 16, 128>}, {transform_indices = @transform_2, window_bounds = array<i64: 1, 8, 128>}]} {
    %c0_i32 = arith.constant 0 : i32
    %0 = arith.cmpi eq, %arg1, %c0_i32 : i32
    %1 = arith.extui %0 : i1 to i32
    %c0_i32_0 = arith.constant 0 : i32
    %2 = arith.cmpi ne, %1, %c0_i32_0 : i32
    scf.if %2 {
      %cst = arith.constant 0.000000e+00 : f32
      %22 = vector.broadcast %cst : f32 to vector<8x128xf32>
      %c0_10 = arith.constant 0 : index
      %c0_11 = arith.constant 0 : index
      %23 = vector.load %arg5[%c0_10, %c0_11] : memref<8x128xf32, #tpu.memory_space<vmem>>, vector<8x128xf32>
      tpu.vector_store %arg5[%c0_10, %c0_11], %22 {strides = array<i32>} : memref<8x128xf32, #tpu.memory_space<vmem>>, vector<8x128xf32>,
    } else {
    }
    %c1_i32 = arith.constant 1 : i32
    %3 = arith.muli %arg0, %c1_i32 : i32
    %4 = arith.addi %3, %arg1 : i32
    %c16_i32 = arith.constant 16 : i32
    %5 = arith.muli %4, %c16_i32 : i32
    %c0 = arith.constant 0 : index
    %c0_1 = arith.constant 0 : index
    %6 = vector.load %arg2[%c0, %c0_1] : memref<16x128xf32, #tpu.memory_space<vmem>>, vector<16x128xf32>
    %c0_2 = arith.constant 0 : index
    %c0_3 = arith.constant 0 : index
    %7 = vector.load %arg3[%c0_2, %c0_3] : memref<16x128xf32, #tpu.memory_space<vmem>>, vector<16x128xf32>
    %8 = math.absf %6 : vector<16x128xf32>
    %9 = math.absf %7 : vector<16x128xf32>
    %10 = arith.subf %8, %9 : vector<16x128xf32>
    %11 = arith.mulf %10, %10 : vector<16x128xf32>
    %c16_i32_4 = arith.constant 16 : i32
    %12 = arith.addi %5, %c16_i32_4 : i32
    %c16_i32_5 = arith.constant 16 : i32
    %13 = arith.cmpi sgt, %12, %c16_i32_5 : i32
    %true = arith.constant true
    %14 = arith.xori %13, %true : i1
    %15 = arith.extui %14 : i1 to i32
    %c0_i32_6 = arith.constant 0 : i32
    %16 = arith.cmpi ne, %15, %c0_i32_6 : i32
    scf.if %16 {
      %c0_10 = arith.constant 0 : index
      %c0_11 = arith.constant 0 : index
      %22 = vector.load %arg5[%c0_10, %c0_11] : memref<8x128xf32, #tpu.memory_space<vmem>>, vector<8x128xf32>
      %23 = vector.shape_cast %11 : vector<16x128xf32> to vector<2x8x128xf32>
      %cst = arith.constant dense<0.000000e+00> : vector<8x128xf32>
      %24 = vector.multi_reduction <add>, %23, %cst [0] : vector<2x8x128xf32> to vector<8x128xf32>
      %25 = arith.addf %22, %24 : vector<8x128xf32>
      %c0_12 = arith.constant 0 : index
      %c0_13 = arith.constant 0 : index
      %26 = vector.load %arg5[%c0_12, %c0_13] : memref<8x128xf32, #tpu.memory_space<vmem>>, vector<8x128xf32>
      tpu.vector_store %arg5[%c0_12, %c0_13], %25 {strides = array<i32>} : memref<8x128xf32, #tpu.memory_space<vmem>>, vector<8x128xf32>,
    } else {
    }
    %17 = arith.extui %13 : i1 to i32
    %c0_i32_7 = arith.constant 0 : i32
    %18 = arith.cmpi ne, %17, %c0_i32_7 : i32
    scf.if %18 {
      %22 = tpu.iota {dimensions = array<i32: 0>} : vector<16x128xi32>
      %23 = vector.broadcast %5 : i32 to vector<16x128xi32>
      %24 = arith.addi %22, %23 : vector<16x128xi32>
      %c16_i32_10 = arith.constant 16 : i32
      %25 = vector.broadcast %c16_i32_10 : i32 to vector<16x128xi32>
      %26 = arith.cmpi slt, %24, %25 : vector<16x128xi32>
      %cst = arith.constant 0.000000e+00 : f32
      %27 = vector.broadcast %cst : f32 to vector<16x128xf32>
      %28 = arith.select %26, %11, %27 : vector<16x128xi1>, vector<16x128xf32>
      %c0_11 = arith.constant 0 : index
      %c0_12 = arith.constant 0 : index
      %29 = vector.load %arg5[%c0_11, %c0_12] : memref<8x128xf32, #tpu.memory_space<vmem>>, vector<8x128xf32>
      %30 = vector.shape_cast %28 : vector<16x128xf32> to vector<2x8x128xf32>
      %cst_13 = arith.constant dense<0.000000e+00> : vector<8x128xf32>
      %31 = vector.multi_reduction <add>, %30, %cst_13 [0] : vector<2x8x128xf32> to vector<8x128xf32>
      %32 = arith.addf %29, %31 : vector<8x128xf32>
      %c0_14 = arith.constant 0 : index
      %c0_15 = arith.constant 0 : index
      %33 = vector.load %arg5[%c0_14, %c0_15] : memref<8x128xf32, #tpu.memory_space<vmem>>, vector<8x128xf32>
      tpu.vector_store %arg5[%c0_14, %c0_15], %32 {strides = array<i32>} : memref<8x128xf32, #tpu.memory_space<vmem>>, vector<8x128xf32>,
    } else {
    }
    %c0_i32_8 = arith.constant 0 : i32
    %19 = arith.cmpi eq, %arg1, %c0_i32_8 : i32
    %20 = arith.extui %19 : i1 to i32
    %c0_i32_9 = arith.constant 0 : i32
    %21 = arith.cmpi ne, %20, %c0_i32_9 : i32
    scf.if %21 {
      %c0_10 = arith.constant 0 : index
      %c0_11 = arith.constant 0 : index
      %22 = vector.load %arg5[%c0_10, %c0_11] : memref<8x128xf32, #tpu.memory_space<vmem>>, vector<8x128xf32>
      %c0_12 = arith.constant 0 : index
      %c0_13 = arith.constant 0 : index
      %c0_14 = arith.constant 0 : index
      %23 = vector.load %arg4[%c0_12, %c0_13, %c0_14] : memref<1x8x128xf32, #tpu.memory_space<vmem>>, vector<1x8x128xf32>
      %24 = vector.shape_cast %23 : vector<1x8x128xf32> to vector<8x128xf32>
      %25 = vector.shape_cast %22 : vector<8x128xf32> to vector<1x8x128xf32>
      tpu.vector_store %arg4[%c0_12, %c0_13, %c0_14], %25 {strides = array<i32>} : memref<1x8x128xf32, #tpu.memory_space<vmem>>, vector<1x8x128xf32>,
    } else {
    }
    return
  }
  func.func @transform_0(%arg0: i32, %arg1: i32) -> (i32, i32) {
    %c1_i32 = arith.constant 1 : i32
    %0 = arith.muli %arg0, %c1_i32 : i32
    %1 = arith.addi %0, %arg1 : i32
    %c0_i32 = arith.constant 0 : i32
    %2 = arith.minsi %1, %c0_i32 : i32
    %c0_i32_0 = arith.constant 0 : i32
    %c0_i32_1 = arith.constant 0 : i32
    return %2, %c0_i32_0 : i32, i32
  }
  func.func @transform_1(%arg0: i32, %arg1: i32) -> (i32, i32) {
    %c1_i32 = arith.constant 1 : i32
    %0 = arith.muli %arg0, %c1_i32 : i32
    %1 = arith.addi %0, %arg1 : i32
    %c0_i32 = arith.constant 0 : i32
    %2 = arith.minsi %1, %c0_i32 : i32
    %c0_i32_0 = arith.constant 0 : i32
    %c0_i32_1 = arith.constant 0 : i32
    return %2, %c0_i32_0 : i32, i32
  }
  func.func @transform_2(%arg0: i32, %arg1: i32) -> (i32, i32, i32) {
    %c0_i32 = arith.constant 0 : i32
    %c0_i32_0 = arith.constant 0 : i32
    %c0_i32_1 = arith.constant 0 : i32
    return %arg0, %c0_i32, %c0_i32_0 : i32, i32, i32
  }
}

</mosaic_0001>

<bundles_post_ra>
// kernel: _dbmse_loss.1
= control target key start
LH: loop header
LB: loop body
LE: loop exit
PB: predicated region body
PF: predicated region fallthrough
CT: control target
= control target key end

     0   :  { %s172_s0 = inlined_call_operand.vmem [shape: f32[16,128], index: 0, kind: input, shape index: {}]   ;;  %s173_s1 = inlined_call_operand.vmem [shape: f32[16,128], index: 1, kind: input, shape index: {}]   ;;  %s174_s2 = inlined_call_operand.vmem [shape: f32[1,8,128], index: 2, kind: output, shape index: {}]  }
   0x1   :  { %v82_v0 = vld [vmem:[%s172_s0] sm:$0xff]  ;;  %v83_v1 = vld [vmem:[%s172_s0 + $0x8] sm:$0xff] }
   0x2   :  { %v84_v2 = vld [vmem:[%s173_s1] sm:$0xff]  ;;  %v85_v3 = vld [vmem:[%s173_s1 + $0x8] sm:$0xff]  ;;  %v86_v4 = vand.u32 2147483647, %v82_v0  ;;  %v87_v5 = vand.u32 2147483647, %v83_v1 }
   0x3   :  { %v88_v6 = vand.u32 2147483647, %v84_v2  ;;  %v89_v7 = vand.u32 2147483647, %v85_v3 }
   0x5   :  { %v90_v8 = vsub.f32 %v86_v4, %v88_v6  ;;  %v91_v9 = vsub.f32 %v87_v5, %v89_v7 }
   0x7   :  { %v92_v10 = vmul.f32 %v90_v8, %v90_v8  ;;  %v93_v11 = vmul.f32 %v91_v9, %v91_v9 }
   0x9   :  { %v101_v12 = vadd.f32 %v93_v11, %v92_v10 }
   0xb   :  { %125 = vst [vmem:[%s174_s2] sm:$0xff] %v101_v12 }

</bundles_post_ra>
